<compile_context>
chip_gen: v5e
topology: v5e:2x2
jax: 0.10.0
libtpu: 0.0.40
codegen_flags: <defaults>
</compile_context>

<pallas_src>
import functools

import jax
import jax.numpy as jnp
from jax.experimental import pallas as pl
from jax.experimental.pallas import tpu as pltpu

EPS = 1e-5
_HALO_ROWS = 8          # halo blocks are fetched in full 8-row (sublane) blocks


def _vmem_budget_bytes():
    cap = 64 * 1024 * 1024
    try:
        cap = int(pltpu.get_tpu_info().vmem_capacity_bytes)
    except Exception:
        pass
    return max(16 * 1024 * 1024, min(cap * 3 // 4, 96 * 1024 * 1024))


# --------------------------------------------------------------------------
# banded weights: fold (dx, Cin) into one contraction axis per dy tap
# --------------------------------------------------------------------------
def _banded_weight(w_oihw, W, p, dtype):
    """(Cout, Cin, kh, kw) OIHW -> (kh, (W+2p)*Cin, W*Cout) banded matrices
    with  B[dy, (x+dx)*Cin+ci, x*Cout+co] = w[co, ci, dy, dx]."""
    cout, cin, kh, kw = w_oihw.shape
    Wp = W + 2 * p
    wt = jnp.transpose(w_oihw, (2, 3, 1, 0)).astype(jnp.float32)  # (kh,kw,ci,co)
    xp = jnp.arange(Wp)[:, None]                 # padded column index
    xo = jnp.arange(W)[None, :]                  # output column index
    dx = xp - xo                                 # (Wp, W)
    valid = (dx >= 0) & (dx < kw)
    taps = wt[:, jnp.clip(dx, 0, kw - 1)]        # (kh, Wp, W, cin, cout)
    taps = taps * valid[None, :, :, None, None]
    b = jnp.transpose(taps, (0, 1, 3, 2, 4)).reshape(kh, Wp * cin, W * cout)
    return b.astype(dtype)


# --------------------------------------------------------------------------
# conv (+ optional fused pre-BN/ReLU on the input) + per-tile BN statistics
# --------------------------------------------------------------------------
def _conv_tile_kernel(scale_ref, shift_ref, xm_ref, xt_ref, xb_ref, w_ref,
                      y_ref, st_ref, win_ref,
                      *, k, p, th, width, cin, cout, apply_preact, mxu_dtype):
    i = pl.program_id(1)
    n_t = pl.num_programs(1)
    W = width
    f32 = jnp.float32

    # scale/shift arrive pre-tiled lane-dense (1, W*cin); read once (hoisted).
    if apply_preact:
        scale = scale_ref[...]
        shift = shift_ref[...]

    def act(v):                               # f32 on the VPU (v5e-safe)
        v = v.astype(f32)
        if apply_preact:                      # fused BN1 + ReLU of conv1 output
            v = jnp.maximum(v * scale + shift, 0.0)
        return v

    # ---- zero-padded, halo'd activation window (lane-dense, f32 scratch) ----
    win_ref[:, 0:p * cin] = jnp.zeros((th + 2 * p, p * cin), f32)        # left pad
    win_ref[:, (p + W) * cin:] = jnp.zeros((th + 2 * p, p * cin), f32)   # right pad
    win_ref[p:p + th, p * cin:(p + W) * cin] = act(xm_ref[0])            # interior

    @pl.when(i == 0)
    def _():                                   # image top border -> zeros
        win_ref[0:p, p * cin:(p + W) * cin] = jnp.zeros((p, W * cin), f32)

    @pl.when(i > 0)
    def _():                                   # halo rows from the tile above
        win_ref[0:p, p * cin:(p + W) * cin] = act(
            xt_ref[0, _HALO_ROWS - p:_HALO_ROWS, :])

    @pl.when(i == n_t - 1)
    def _():                                   # image bottom border -> zeros
        win_ref[th + p:, p * cin:(p + W) * cin] = jnp.zeros((p, W * cin), f32)

    @pl.when(i < n_t - 1)
    def _():                                   # halo rows from the tile below
        win_ref[th + p:, p * cin:(p + W) * cin] = act(xb_ref[0, 0:p, :])

    # ---- conv = k accumulated MXU matmuls against the banded weights --------
    # (dx taps + Cin folded into the contraction axis; no im2col copies)
    acc = jnp.dot(win_ref[0:th, :].astype(mxu_dtype), w_ref[0],
                  preferred_element_type=f32)
    for dy in range(1, k):
        acc = acc + jnp.dot(win_ref[dy:dy + th, :].astype(mxu_dtype), w_ref[dy],
                            preferred_element_type=f32)          # (th, W*cout) f32

    # ---- per-tile BatchNorm statistics: mean + centered sum of squares ------
    # Channel folding on the lane-dense layout uses tiny 0/1 selection matmuls
    # (MXU) to avoid any in-kernel relayout of the big tile.
    sel = (jax.lax.broadcasted_iota(jnp.int32, (W * cout, cout), 0) % cout ==
           jax.lax.broadcasted_iota(jnp.int32, (W * cout, cout), 1)).astype(f32)
    selt = (jax.lax.broadcasted_iota(jnp.int32, (cout, W * cout), 1) % cout ==
            jax.lax.broadcasted_iota(jnp.int32, (cout, W * cout), 0)).astype(f32)
    inv_cnt = 1.0 / float(th * W)
    rowsum = jnp.sum(acc, axis=0, keepdims=True)                     # (1, W*cout)
    tmean = jnp.dot(rowsum, sel, preferred_element_type=f32) * inv_cnt   # (1, cout)
    mean_dense = jnp.dot(tmean, selt, preferred_element_type=f32)    # (1, W*cout)
    d = acc - mean_dense
    m2 = jnp.dot(jnp.sum(d * d, axis=0, keepdims=True), sel,
                 preferred_element_type=f32)                         # (1, cout)
    st_ref[0, 0, 0:1, :] = tmean
    st_ref[0, 0, 1:2, :] = m2

    # ---- lane-dense store of the raw (pre-BN) conv tile ---------------------
    y_ref[0] = acc.astype(y_ref.dtype)


def _conv_call(x, w_banded, scale_row, shift_row, *, k, p, th, W, cin, cout,
               apply_preact, mxu_dtype, vmem_limit):
    """x: (N, H, W*cin) lane-dense.  Returns raw conv (N, H, W*cout) in
    mxu_dtype plus per-tile (mean, M2) stats (N, n_t, 2, cout) in f32."""
    N, H, _ = x.shape
    n_t = H // th
    hb = th // _HALO_ROWS                 # halo blocks (of 8 rows) per row tile
    last_hblk = H // _HALO_ROWS - 1
    Wp = W + 2 * p

    kernel = functools.partial(
        _conv_tile_kernel, k=k, p=p, th=th, width=W, cin=cin, cout=cout,
        apply_preact=apply_preact, mxu_dtype=mxu_dtype)

    y, stats = pl.pallas_call(
        kernel,
        grid=(N, n_t),
        in_specs=[
            pl.BlockSpec((1, W * cin), lambda n, i: (0, 0)),            # scale row
            pl.BlockSpec((1, W * cin), lambda n, i: (0, 0)),            # shift row
            pl.BlockSpec((1, th, W * cin), lambda n, i: (n, i, 0)),     # tile rows
            pl.BlockSpec((1, _HALO_ROWS, W * cin),                      # halo above
                         lambda n, i: (n, jnp.maximum(i * hb - 1, 0), 0)),
            pl.BlockSpec((1, _HALO_ROWS, W * cin),                      # halo below
                         lambda n, i: (n, jnp.minimum((i + 1) * hb, last_hblk), 0)),
            pl.BlockSpec((k, Wp * cin, W * cout), lambda n, i: (0, 0, 0)),
        ],
        out_specs=[
            pl.BlockSpec((1, th, W * cout), lambda n, i: (n, i, 0)),
            pl.BlockSpec((1, 1, 2, cout), lambda n, i: (n, i, 0, 0)),
        ],
        out_shape=[
            jax.ShapeDtypeStruct((N, H, W * cout), mxu_dtype),
            jax.ShapeDtypeStruct((N, n_t, 2, cout), jnp.float32),
        ],
        scratch_shapes=[pltpu.VMEM((th + 2 * p, Wp * cin), jnp.float32)],
        compiler_params=pltpu.CompilerParams(
            dimension_semantics=("parallel", "parallel"),
            vmem_limit_bytes=vmem_limit),
    )(scale_row, shift_row, x, x, x, w_banded)
    return y, stats


# --------------------------------------------------------------------------
# final BatchNorm + ReLU on the lane-dense (rows, W*Cout) layout
# --------------------------------------------------------------------------
def _bn_relu_kernel(scale_ref, shift_ref, x_ref, o_ref):
    o_ref[...] = jnp.maximum(
        x_ref[...].astype(jnp.float32) * scale_ref[...] + shift_ref[...], 0.0)


def _pick_rows(R, cap_rows):
    cands = [t for t in range(1, R + 1) if R % t == 0 and (t % 8 == 0 or t == R)]
    fits = [t for t in cands if t <= cap_rows]
    return max(fits) if fits else min(cands)


def _bn_relu(x2d, scale_row, shift_row, *, vmem_limit):
    R, C = x2d.shape
    es = x2d.dtype.itemsize
    per_row = 2 * C * (es + 4) + 64               # dbl-buffered in + f32 out
    tr = _pick_rows(R, max(8, vmem_limit // (2 * per_row)))
    return pl.pallas_call(
        _bn_relu_kernel,
        grid=(R // tr,),
        in_specs=[pl.BlockSpec((1, C), lambda r: (0, 0)),
                  pl.BlockSpec((1, C), lambda r: (0, 0)),
                  pl.BlockSpec((tr, C), lambda r: (r, 0))],
        out_specs=pl.BlockSpec((tr, C), lambda r: (r, 0)),
        out_shape=jax.ShapeDtypeStruct((R, C), jnp.float32),
        compiler_params=pltpu.CompilerParams(
            dimension_semantics=("parallel",),
            vmem_limit_bytes=vmem_limit),
    )(scale_row, shift_row, x2d)


# --------------------------------------------------------------------------
# helpers + top-level wrapper
# --------------------------------------------------------------------------
def _bn_coeffs(stats, gamma, beta, tile_count):
    """Robust pooled-variance merge of per-tile (mean, M2) partials, folded
    into a single per-channel FMA (scale, shift).  Biased variance (PyTorch
    training-mode normalization)."""
    C = stats.shape[-1]
    means = stats[..., 0, :].reshape(-1, C)       # (T, C)
    m2s = stats[..., 1, :].reshape(-1, C)
    T = means.shape[0]
    mean = jnp.mean(means, axis=0)
    var = (jnp.sum(m2s, axis=0)
           + tile_count * jnp.sum((means - mean) ** 2, axis=0)) / (T * tile_count)
    var = jnp.maximum(var, 0.0)
    scale = gamma * jax.lax.rsqrt(var + EPS)
    shift = beta - mean * scale
    return scale, shift


def _pick_row_tile(H, W, cin, cout, k, p, es, budget):
    """Largest 8-aligned row tile whose working set fits half the VMEM budget."""
    Wp = W + 2 * p
    wb = 2 * k * Wp * cin * W * cout * es          # banded weights (x2 buffers)

    def need(t):
        return (2 * t * W * cin * es               # main input (dbl-buffered)
                + 4 * _HALO_ROWS * W * cin * es    # halo blocks
                + 2 * t * W * cout * es            # output blocks
                + (t + 2 * p) * Wp * cin * 4       # f32 window scratch
                + wb + (1 << 16))

    cands = [t for t in range(8, H + 1, 8) if H % t == 0] or [H]
    fits = [t for t in cands if need(t) <= budget // 2]
    return max(fits) if fits else min(cands)


def double_conv(x_nchw, w1, g1, b1, w2, g2, b2, *, padding, row_tile=None,
                mxu_dtype=jnp.bfloat16):
    """x_nchw: (N, Cin, H, W); w1: (Cmid, Cin, k, k); w2: (Cout, Cmid, k, k)."""
    N, Cin, H, W = x_nchw.shape
    Cmid = w1.shape[0]
    Cout = w2.shape[0]
    kh, kw = w1.shape[2], w1.shape[3]
    p = padding
    assert kh == kw == 2 * p + 1 and p >= 1, "expects same-padding odd convs"
    assert H % 8 == 0 and p <= _HALO_ROWS

    vmem_limit = _vmem_budget_bytes()
    es = jnp.dtype(mxu_dtype).itemsize
    th = row_tile if row_tile is not None else _pick_row_tile(
        H, W, max(Cin, Cmid), max(Cmid, Cout), kh, p, es, vmem_limit)
    assert H % th == 0 and th % 8 == 0, (H, th)

    # lane-dense NHWC activations: (N, H, W*C); bf16 HBM residency by default
    x = jnp.transpose(x_nchw, (0, 2, 3, 1)).reshape(N, H, W * Cin).astype(mxu_dtype)
    wb1 = _banded_weight(w1, W, p, mxu_dtype)
    wb2 = _banded_weight(w2, W, p, mxu_dtype)
    count = th * W                                 # per-tile element count

    # conv1 (raw) + per-tile batch statistics
    dummy = jnp.zeros((1, W * Cin), jnp.float32)
    y1, st1 = _conv_call(x, wb1, dummy, dummy, k=kh, p=p, th=th, W=W,
                         cin=Cin, cout=Cmid, apply_preact=False,
                         mxu_dtype=mxu_dtype, vmem_limit=vmem_limit)
    scale1, shift1 = _bn_coeffs(st1, g1, b1, count)

    # BN1 + ReLU fused into conv2's input stage.  The lane-dense (1, W*Cmid)
    # scale/shift rows are built ONCE here (broadcast hoisted out of kernel).
    y2, st2 = _conv_call(
        y1, wb2,
        jnp.tile(scale1, W).reshape(1, W * Cmid),
        jnp.tile(shift1, W).reshape(1, W * Cmid),
        k=kh, p=p, th=th, W=W, cin=Cmid, cout=Cout, apply_preact=True,
        mxu_dtype=mxu_dtype, vmem_limit=vmem_limit)
    scale2, shift2 = _bn_coeffs(st2, g2, b2, count)

    # final BN2 + ReLU, lane-dense (N*H, W*Cout)
    out_flat = _bn_relu(y2.reshape(N * H, W * Cout),
                        jnp.tile(scale2, W).reshape(1, W * Cout),
                        jnp.tile(shift2, W).reshape(1, W * Cout),
                        vmem_limit=vmem_limit)
    return out_flat.reshape(N, H, W, Cout).transpose(0, 3, 1, 2)    # NCHW


# --------------------------------------------------------------------------
# pure-JAX reference (mirrors the PyTorch module in training mode)
# --------------------------------------------------------------------------
def ref_double_conv(x, w1, g1, b1, w2, g2, b2, *, padding):
    def conv(x, w):
        return jax.lax.conv_general_dilated(
            x, w, window_strides=(1, 1),
            padding=[(padding, padding), (padding, padding)],
            dimension_numbers=("NCHW", "OIHW", "NCHW"),
            precision=jax.lax.Precision.HIGHEST)

    def bn_relu(y, g, b):
        mean = y.mean(axis=(0, 2, 3), keepdims=True)
        var = ((y - mean) ** 2).mean(axis=(0, 2, 3), keepdims=True)
        yn = (y - mean) / jnp.sqrt(var + EPS)
        yn = yn * g.reshape(1, -1, 1, 1) + b.reshape(1, -1, 1, 1)
        return jnp.maximum(yn, 0.0)

    y = bn_relu(conv(x, w1), g1, b1)
    return bn_relu(conv(y, w2), g2, b2)


if __name__ == "__main__":
    # DoubleConv(in_channels=4, out_channels=8, kernel_size=3, padding=1)
    N, Cin, H, W = 2, 4, 16, 16
    Cmid = Cout = 8
    k, pad = 3, 1

    key = jax.random.PRNGKey(0)
    kx, kw1, kw2, kg1, kb1, kg2, kb2 = jax.random.split(key, 7)

    x = jax.random.normal(kx, (N, Cin, H, W), jnp.float32)
    w1 = jax.random.normal(kw1, (Cmid, Cin, k, k), jnp.float32) * 0.1
    w2 = jax.random.normal(kw2, (Cout, Cmid, k, k), jnp.float32) * 0.1
    g1 = 1.0 + 0.1 * jax.random.normal(kg1, (Cmid,), jnp.float32)
    b1 = 0.1 * jax.random.normal(kb1, (Cmid,), jnp.float32)
    g2 = 1.0 + 0.1 * jax.random.normal(kg2, (Cout,), jnp.float32)
    b2 = 0.1 * jax.random.normal(kb2, (Cout,), jnp.float32)

    ref = ref_double_conv(x, w1, g1, b1, w2, g2, b2, padding=pad)

    # 1) f32 MXU operands, multi-tile path (exercises halo exchange): tight check
    out = jax.block_until_ready(
        double_conv(x, w1, g1, b1, w2, g2, b2, padding=pad, row_tile=8,
                    mxu_dtype=jnp.float32))
    assert out.shape == (N, Cout, H, W), out.shape
    err = float(jnp.max(jnp.abs(out - ref)))
    assert jnp.allclose(out, ref, atol=1e-3, rtol=1e-3), err

    # 2) bf16 MXU operands + bf16 intermediates (default perf path), multi-tile
    out_bf = jax.block_until_ready(
        double_conv(x, w1, g1, b1, w2, g2, b2, padding=pad, row_tile=8))
    err_bf = float(jnp.max(jnp.abs(out_bf - ref)))
    assert jnp.allclose(out_bf, ref, atol=5e-2, rtol=5e-2), err_bf

    # 3) bf16, auto (VMEM-budget) row tile -> single-tile border-mask path
    out_auto = jax.block_until_ready(
        double_conv(x, w1, g1, b1, w2, g2, b2, padding=pad))
    err_auto = float(jnp.max(jnp.abs(out_auto - ref)))
    assert jnp.allclose(out_auto, ref, atol=5e-2, rtol=5e-2), err_auto

    print("KERNEL_OK")
</pallas_src>

<mosaic_0001>
module attributes {stable_mosaic.version = 11 : i64} {
  func.func @_conv_tile_kernel(%arg0: i32, %arg1: i32, %arg2: memref<1x64xf32, #tpu.memory_space<vmem>>, %arg3: memref<1x64xf32, #tpu.memory_space<vmem>>, %arg4: memref<1x8x64xf32, #tpu.memory_space<vmem>>, %arg5: memref<1x8x64xf32, #tpu.memory_space<vmem>>, %arg6: memref<1x8x64xf32, #tpu.memory_space<vmem>>, %arg7: memref<3x72x128xf32, #tpu.memory_space<vmem>>, %arg8: memref<1x8x128xf32, #tpu.memory_space<vmem>>, %arg9: memref<1x1x2x8xf32, #tpu.memory_space<vmem>>, %arg10: memref<10x72xf32, #tpu.memory_space<vmem>>) attributes {dimension_semantics = [#tpu.dimension_semantics<parallel>, #tpu.dimension_semantics<parallel>], iteration_bounds = array<i64: 2, 2>, scalar_prefetch = 0 : i64, scratch_operands = 1 : i64, tpu.core_type = #tpu.core_type<tc>, window_params = [{pipeline_mode = #tpu.pipeline_mode<synchronous>, transform_indices = @transform_0, window_bounds = array<i64: 1, 64>}, {pipeline_mode = #tpu.pipeline_mode<synchronous>, transform_indices = @transform_1, window_bounds = array<i64: 1, 64>}, {transform_indices = @transform_2, window_bounds = array<i64: 1, 8, 64>}, {transform_indices = @transform_3, window_bounds = array<i64: 1, 8, 64>}, {transform_indices = @transform_4, window_bounds = array<i64: 1, 8, 64>}, {pipeline_mode = #tpu.pipeline_mode<synchronous>, transform_indices = @transform_5, window_bounds = array<i64: 3, 72, 128>}, {transform_indices = @transform_6, window_bounds = array<i64: 1, 8, 128>}, {transform_indices = @transform_7, window_bounds = array<i64: 1, 1, 2, 8>}]} {
    %cst = arith.constant 0.000000e+00 : f32
    %0 = vector.broadcast %cst : f32 to vector<10x4xf32>
    %c0 = arith.constant 0 : index
    %c0_0 = arith.constant 0 : index
    %1 = vector.load %arg10[%c0, %c0_0] : memref<10x72xf32, #tpu.memory_space<vmem>>, vector<10x4xf32>
    tpu.vector_store %arg10[%c0, %c0_0], %0 {strides = array<i32>} : memref<10x72xf32, #tpu.memory_space<vmem>>, vector<10x4xf32>,
    %cst_1 = arith.constant 0.000000e+00 : f32
    %2 = vector.broadcast %cst_1 : f32 to vector<10x4xf32>
    %c0_2 = arith.constant 0 : index
    %c68 = arith.constant 68 : index
    %3 = vector.load %arg10[%c0_2, %c68] : memref<10x72xf32, #tpu.memory_space<vmem>>, vector<10x4xf32>
    tpu.vector_store %arg10[%c0_2, %c68], %2 {strides = array<i32>} : memref<10x72xf32, #tpu.memory_space<vmem>>, vector<10x4xf32>,
    %c0_3 = arith.constant 0 : index
    %c0_4 = arith.constant 0 : index
    %c0_5 = arith.constant 0 : index
    %4 = vector.load %arg4[%c0_3, %c0_4, %c0_5] : memref<1x8x64xf32, #tpu.memory_space<vmem>>, vector<1x8x64xf32>
    %5 = vector.shape_cast %4 : vector<1x8x64xf32> to vector<8x64xf32>
    %c1 = arith.constant 1 : index
    %c4 = arith.constant 4 : index
    %6 = vector.load %arg10[%c1, %c4] : memref<10x72xf32, #tpu.memory_space<vmem>>, vector<8x64xf32>
    tpu.vector_store %arg10[%c1, %c4], %5 {strides = array<i32>} : memref<10x72xf32, #tpu.memory_space<vmem>>, vector<8x64xf32>,
    %c0_i32 = arith.constant 0 : i32
    %7 = arith.cmpi eq, %arg1, %c0_i32 : i32
    %8 = arith.extui %7 : i1 to i32
    %c0_i32_6 = arith.constant 0 : i32
    %9 = arith.cmpi ne, %8, %c0_i32_6 : i32
    scf.if %9 {
      %cst_57 = arith.constant 0.000000e+00 : f32
      %96 = vector.broadcast %cst_57 : f32 to vector<1x64xf32>
      %c0_58 = arith.constant 0 : index
      %c4_59 = arith.constant 4 : index
      %97 = vector.load %arg10[%c0_58, %c4_59] : memref<10x72xf32, #tpu.memory_space<vmem>>, vector<1x64xf32>
      tpu.vector_store %arg10[%c0_58, %c4_59], %96 {strides = array<i32>} : memref<10x72xf32, #tpu.memory_space<vmem>>, vector<1x64xf32>,
    } else {
    }
    %c0_i32_7 = arith.constant 0 : i32
    %10 = arith.cmpi sgt, %arg1, %c0_i32_7 : i32
    %11 = arith.extui %10 : i1 to i32
    %c0_i32_8 = arith.constant 0 : i32
    %12 = arith.cmpi ne, %11, %c0_i32_8 : i32
    scf.if %12 {
      %c0_57 = arith.constant 0 : index
      %c7 = arith.constant 7 : index
      %c0_58 = arith.constant 0 : index
      %96 = vector.load %arg5[%c0_57, %c7, %c0_58] : memref<1x8x64xf32, #tpu.memory_space<vmem>>, vector<1x1x64xf32>
      %97 = vector.shape_cast %96 : vector<1x1x64xf32> to vector<1x64xf32>
      %c0_59 = arith.constant 0 : index
      %c4_60 = arith.constant 4 : index
      %98 = vector.load %arg10[%c0_59, %c4_60] : memref<10x72xf32, #tpu.memory_space<vmem>>, vector<1x64xf32>
      tpu.vector_store %arg10[%c0_59, %c4_60], %97 {strides = array<i32>} : memref<10x72xf32, #tpu.memory_space<vmem>>, vector<1x64xf32>,
    } else {
    }
    %c1_i32 = arith.constant 1 : i32
    %13 = arith.cmpi eq, %arg1, %c1_i32 : i32
    %14 = arith.extui %13 : i1 to i32
    %c0_i32_9 = arith.constant 0 : i32
    %15 = arith.cmpi ne, %14, %c0_i32_9 : i32
    scf.if %15 {
      %cst_57 = arith.constant 0.000000e+00 : f32
      %96 = vector.broadcast %cst_57 : f32 to vector<1x64xf32>
      %c9 = arith.constant 9 : index
      %c4_58 = arith.constant 4 : index
      %97 = vector.load %arg10[%c9, %c4_58] : memref<10x72xf32, #tpu.memory_space<vmem>>, vector<1x64xf32>
      tpu.vector_store %arg10[%c9, %c4_58], %96 {strides = array<i32>} : memref<10x72xf32, #tpu.memory_space<vmem>>, vector<1x64xf32>,
    } else {
    }
    %c1_i32_10 = arith.constant 1 : i32
    %16 = arith.cmpi slt, %arg1, %c1_i32_10 : i32
    %17 = arith.extui %16 : i1 to i32
    %c0_i32_11 = arith.constant 0 : i32
    %18 = arith.cmpi ne, %17, %c0_i32_11 : i32
    scf.if %18 {
      %c0_57 = arith.constant 0 : index
      %c0_58 = arith.constant 0 : index
      %c0_59 = arith.constant 0 : index
      %96 = vector.load %arg6[%c0_57, %c0_58, %c0_59] : memref<1x8x64xf32, #tpu.memory_space<vmem>>, vector<1x1x64xf32>
      %97 = vector.shape_cast %96 : vector<1x1x64xf32> to vector<1x64xf32>
      %c9 = arith.constant 9 : index
      %c4_60 = arith.constant 4 : index
      %98 = vector.load %arg10[%c9, %c4_60] : memref<10x72xf32, #tpu.memory_space<vmem>>, vector<1x64xf32>
      tpu.vector_store %arg10[%c9, %c4_60], %97 {strides = array<i32>} : memref<10x72xf32, #tpu.memory_space<vmem>>, vector<1x64xf32>,
    } else {
    }
    %c0_12 = arith.constant 0 : index
    %c0_13 = arith.constant 0 : index
    %19 = vector.load %arg10[%c0_12, %c0_13] : memref<10x72xf32, #tpu.memory_space<vmem>>, vector<8x72xf32>
    %c0_14 = arith.constant 0 : index
    %c0_15 = arith.constant 0 : index
    %c0_16 = arith.constant 0 : index
    %20 = vector.load %arg7[%c0_14, %c0_15, %c0_16] : memref<3x72x128xf32, #tpu.memory_space<vmem>>, vector<1x72x128xf32>
    %21 = vector.shape_cast %20 : vector<1x72x128xf32> to vector<72x128xf32>
    %cst_17 = arith.constant dense<0.000000e+00> : vector<8x128xf32>
    %22 = tpu.matmul %19, %21, %cst_17 {dimension_numbers = #tpu.dot_dimension_numbers<[1], [0], [0], [1], [0, 0, 1, 1], [], []>} : vector<8x72xf32>, vector<72x128xf32>, vector<8x128xf32> -> vector<8x128xf32>
    %c1_18 = arith.constant 1 : index
    %c0_19 = arith.constant 0 : index
    %23 = vector.load %arg10[%c1_18, %c0_19] : memref<10x72xf32, #tpu.memory_space<vmem>>, vector<8x72xf32>
    %c1_20 = arith.constant 1 : index
    %c0_21 = arith.constant 0 : index
    %c0_22 = arith.constant 0 : index
    %24 = vector.load %arg7[%c1_20, %c0_21, %c0_22] : memref<3x72x128xf32, #tpu.memory_space<vmem>>, vector<1x72x128xf32>
    %25 = vector.shape_cast %24 : vector<1x72x128xf32> to vector<72x128xf32>
    %cst_23 = arith.constant dense<0.000000e+00> : vector<8x128xf32>
    %26 = tpu.matmul %23, %25, %cst_23 {dimension_numbers = #tpu.dot_dimension_numbers<[1], [0], [0], [1], [0, 0, 1, 1], [], []>} : vector<8x72xf32>, vector<72x128xf32>, vector<8x128xf32> -> vector<8x128xf32>
    %27 = arith.addf %22, %26 : vector<8x128xf32>
    %c2 = arith.constant 2 : index
    %c0_24 = arith.constant 0 : index
    %28 = vector.load %arg10[%c2, %c0_24] : memref<10x72xf32, #tpu.memory_space<vmem>>, vector<8x72xf32>
    %c2_25 = arith.constant 2 : index
    %c0_26 = arith.constant 0 : index
    %c0_27 = arith.constant 0 : index
    %29 = vector.load %arg7[%c2_25, %c0_26, %c0_27] : memref<3x72x128xf32, #tpu.memory_space<vmem>>, vector<1x72x128xf32>
    %30 = vector.shape_cast %29 : vector<1x72x128xf32> to vector<72x128xf32>
    %cst_28 = arith.constant dense<0.000000e+00> : vector<8x128xf32>
    %31 = tpu.matmul %28, %30, %cst_28 {dimension_numbers = #tpu.dot_dimension_numbers<[1], [0], [0], [1], [0, 0, 1, 1], [], []>} : vector<8x72xf32>, vector<72x128xf32>, vector<8x128xf32> -> vector<8x128xf32>
    %32 = arith.addf %27, %31 : vector<8x128xf32>
    %33 = tpu.iota {dimensions = array<i32: 0>} : vector<128x8xi32>
    %c8_i32 = arith.constant 8 : i32
    %c0_i32_29 = arith.constant 0 : i32
    %34 = arith.cmpi eq, %c8_i32, %c0_i32_29 : i32
    %c1_i32_30 = arith.constant 1 : i32
    %35 = arith.select %34, %c1_i32_30, %c8_i32 : i32
    %36 = vector.broadcast %35 : i32 to vector<128x8xi32>
    %37 = arith.remsi %33, %36 : vector<128x8xi32>
    %c0_i32_31 = arith.constant 0 : i32
    %38 = vector.broadcast %c0_i32_31 : i32 to vector<128x8xi32>
    %39 = arith.cmpi ne, %37, %38 : vector<128x8xi32>
    %c0_i32_32 = arith.constant 0 : i32
    %40 = vector.broadcast %c0_i32_32 : i32 to vector<128x8xi32>
    %41 = arith.cmpi slt, %37, %40 : vector<128x8xi32>
    %c0_i32_33 = arith.constant 0 : i32
    %42 = arith.cmpi slt, %35, %c0_i32_33 : i32
    %43 = vector.broadcast %42 : i1 to vector<128x8xi1>
    %44 = vector.broadcast %43 : vector<128x8xi1> to vector<128x8xi1>
    %45 = arith.xori %41, %44 : vector<128x8xi1>
    %46 = arith.andi %45, %39 : vector<128x8xi1>
    %47 = vector.broadcast %35 : i32 to vector<128x8xi32>
    %48 = arith.addi %37, %47 : vector<128x8xi32>
    %49 = arith.select %46, %48, %37 : vector<128x8xi1>, vector<128x8xi32>
    %50 = tpu.iota {dimensions = array<i32: 1>} : vector<128x8xi32>
    %51 = arith.cmpi eq, %49, %50 : vector<128x8xi32>
    %52 = arith.extui %51 : vector<128x8xi1> to vector<128x8xi32>
    %53 = arith.sitofp %52 : vector<128x8xi32> to vector<128x8xf32>
    %54 = tpu.iota {dimensions = array<i32: 1>} : vector<8x128xi32>
    %c8_i32_34 = arith.constant 8 : i32
    %c0_i32_35 = arith.constant 0 : i32
    %55 = arith.cmpi eq, %c8_i32_34, %c0_i32_35 : i32
    %c1_i32_36 = arith.constant 1 : i32
    %56 = arith.select %55, %c1_i32_36, %c8_i32_34 : i32
    %57 = vector.broadcast %56 : i32 to vector<8x128xi32>
    %58 = arith.remsi %54, %57 : vector<8x128xi32>
    %c0_i32_37 = arith.constant 0 : i32
    %59 = vector.broadcast %c0_i32_37 : i32 to vector<8x128xi32>
    %60 = arith.cmpi ne, %58, %59 : vector<8x128xi32>
    %c0_i32_38 = arith.constant 0 : i32
    %61 = vector.broadcast %c0_i32_38 : i32 to vector<8x128xi32>
    %62 = arith.cmpi slt, %58, %61 : vector<8x128xi32>
    %c0_i32_39 = arith.constant 0 : i32
    %63 = arith.cmpi slt, %56, %c0_i32_39 : i32
    %64 = vector.broadcast %63 : i1 to vector<8x128xi1>
    %65 = vector.broadcast %64 : vector<8x128xi1> to vector<8x128xi1>
    %66 = arith.xori %62, %65 : vector<8x128xi1>
    %67 = arith.andi %66, %60 : vector<8x128xi1>
    %68 = vector.broadcast %56 : i32 to vector<8x128xi32>
    %69 = arith.addi %58, %68 : vector<8x128xi32>
    %70 = arith.select %67, %69, %58 : vector<8x128xi1>, vector<8x128xi32>
    %71 = tpu.iota {dimensions = array<i32: 0>} : vector<8x128xi32>
    %72 = arith.cmpi eq, %70, %71 : vector<8x128xi32>
    %73 = arith.extui %72 : vector<8x128xi1> to vector<8x128xi32>
    %74 = arith.sitofp %73 : vector<8x128xi32> to vector<8x128xf32>
    %cst_40 = arith.constant dense<0.000000e+00> : vector<128xf32>
    %75 = vector.multi_reduction <add>, %32, %cst_40 [0] : vector<8x128xf32> to vector<128xf32>
    %76 = vector.shape_cast %75 : vector<128xf32> to vector<1x128xf32>
    %cst_41 = arith.constant dense<0.000000e+00> : vector<1x8xf32>
    %77 = tpu.matmul %76, %53, %cst_41 {dimension_numbers = #tpu.dot_dimension_numbers<[1], [0], [0], [1], [0, 0, 1, 1], [], []>} : vector<1x128xf32>, vector<128x8xf32>, vector<1x8xf32> -> vector<1x8xf32>
    %cst_42 = arith.constant 7.812500e-03 : f32
    %78 = vector.broadcast %cst_42 : f32 to vector<1x8xf32>
    %79 = arith.mulf %77, %78 : vector<1x8xf32>
    %cst_43 = arith.constant dense<0.000000e+00> : vector<1x128xf32>
    %80 = tpu.matmul %79, %74, %cst_43 {dimension_numbers = #tpu.dot_dimension_numbers<[1], [0], [0], [1], [0, 0, 1, 1], [], []>} : vector<1x8xf32>, vector<8x128xf32>, vector<1x128xf32> -> vector<1x128xf32>
    %81 = vector.broadcast %80 : vector<1x128xf32> to vector<8x128xf32>
    %82 = arith.subf %32, %81 : vector<8x128xf32>
    %83 = arith.mulf %82, %82 : vector<8x128xf32>
    %cst_44 = arith.constant dense<0.000000e+00> : vector<128xf32>
    %84 = vector.multi_reduction <add>, %83, %cst_44 [0] : vector<8x128xf32> to vector<128xf32>
    %85 = vector.shape_cast %84 : vector<128xf32> to vector<1x128xf32>
    %cst_45 = arith.constant dense<0.000000e+00> : vector<1x8xf32>
    %86 = tpu.matmul %85, %53, %cst_45 {dimension_numbers = #tpu.dot_dimension_numbers<[1], [0], [0], [1], [0, 0, 1, 1], [], []>} : vector<1x128xf32>, vector<128x8xf32>, vector<1x8xf32> -> vector<1x8xf32>
    %c0_46 = arith.constant 0 : index
    %c0_47 = arith.constant 0 : index
    %c0_48 = arith.constant 0 : index
    %c0_49 = arith.constant 0 : index
    %87 = vector.load %arg9[%c0_46, %c0_47, %c0_48, %c0_49] : memref<1x1x2x8xf32, #tpu.memory_space<vmem>>, vector<1x1x1x8xf32>
    %88 = vector.shape_cast %87 : vector<1x1x1x8xf32> to vector<1x8xf32>
    %89 = vector.shape_cast %79 : vector<1x8xf32> to vector<1x1x1x8xf32>
    tpu.vector_store %arg9[%c0_46, %c0_47, %c0_48, %c0_49], %89 {strides = array<i32>} : memref<1x1x2x8xf32, #tpu.memory_space<vmem>>, vector<1x1x1x8xf32>,
    %c0_50 = arith.constant 0 : index
    %c0_51 = arith.constant 0 : index
    %c1_52 = arith.constant 1 : index
    %c0_53 = arith.constant 0 : index
    %90 = vector.load %arg9[%c0_50, %c0_51, %c1_52, %c0_53] : memref<1x1x2x8xf32, #tpu.memory_space<vmem>>, vector<1x1x1x8xf32>
    %91 = vector.shape_cast %90 : vector<1x1x1x8xf32> to vector<1x8xf32>
    %92 = vector.shape_cast %86 : vector<1x8xf32> to vector<1x1x1x8xf32>
    tpu.vector_store %arg9[%c0_50, %c0_51, %c1_52, %c0_53], %92 {strides = array<i32>} : memref<1x1x2x8xf32, #tpu.memory_space<vmem>>, vector<1x1x1x8xf32>,
    %c0_54 = arith.constant 0 : index
    %c0_55 = arith.constant 0 : index
    %c0_56 = arith.constant 0 : index
    %93 = vector.load %arg8[%c0_54, %c0_55, %c0_56] : memref<1x8x128xf32, #tpu.memory_space<vmem>>, vector<1x8x128xf32>
    %94 = vector.shape_cast %93 : vector<1x8x128xf32> to vector<8x128xf32>
    %95 = vector.shape_cast %32 : vector<8x128xf32> to vector<1x8x128xf32>
    tpu.vector_store %arg8[%c0_54, %c0_55, %c0_56], %95 {strides = array<i32>} : memref<1x8x128xf32, #tpu.memory_space<vmem>>, vector<1x8x128xf32>,
    return
  }
  func.func @transform_0(%arg0: i32, %arg1: i32) -> (i32, i32) {
    %c0_i32 = arith.constant 0 : i32
    %c0_i32_0 = arith.constant 0 : i32
    %c0_i32_1 = arith.constant 0 : i32
    return %c0_i32, %c0_i32_0 : i32, i32
  }
  func.func @transform_1(%arg0: i32, %arg1: i32) -> (i32, i32) {
    %c0_i32 = arith.constant 0 : i32
    %c0_i32_0 = arith.constant 0 : i32
    %c0_i32_1 = arith.constant 0 : i32
    return %c0_i32, %c0_i32_0 : i32, i32
  }
  func.func @transform_2(%arg0: i32, %arg1: i32) -> (i32, i32, i32) {
    %c0_i32 = arith.constant 0 : i32
    %c0_i32_0 = arith.constant 0 : i32
    return %arg0, %arg1, %c0_i32 : i32, i32, i32
  }
  func.func @transform_3(%arg0: i32, %arg1: i32) -> (i32, i32, i32) {
    %c1_i32 = arith.constant 1 : i32
    %0 = arith.muli %arg1, %c1_i32 : i32
    %c1_i32_0 = arith.constant 1 : i32
    %1 = arith.subi %0, %c1_i32_0 : i32
    %c0_i32 = arith.constant 0 : i32
    %2 = arith.maxsi %1, %c0_i32 : i32
    %c0_i32_1 = arith.constant 0 : i32
    %c0_i32_2 = arith.constant 0 : i32
    return %arg0, %2, %c0_i32_1 : i32, i32, i32
  }
  func.func @transform_4(%arg0: i32, %arg1: i32) -> (i32, i32, i32) {
    %c1_i32 = arith.constant 1 : i32
    %0 = arith.addi %arg1, %c1_i32 : i32
    %c1_i32_0 = arith.constant 1 : i32
    %1 = arith.muli %0, %c1_i32_0 : i32
    %c1_i32_1 = arith.constant 1 : i32
    %2 = arith.minsi %1, %c1_i32_1 : i32
    %c0_i32 = arith.constant 0 : i32
    %c0_i32_2 = arith.constant 0 : i32
    return %arg0, %2, %c0_i32 : i32, i32, i32
  }
  func.func @transform_5(%arg0: i32, %arg1: i32) -> (i32, i32, i32) {
    %c0_i32 = arith.constant 0 : i32
    %c0_i32_0 = arith.constant 0 : i32
    %c0_i32_1 = arith.constant 0 : i32
    %c0_i32_2 = arith.constant 0 : i32
    return %c0_i32, %c0_i32_0, %c0_i32_1 : i32, i32, i32
  }
  func.func @transform_6(%arg0: i32, %arg1: i32) -> (i32, i32, i32) {
    %c0_i32 = arith.constant 0 : i32
    %c0_i32_0 = arith.constant 0 : i32
    return %arg0, %arg1, %c0_i32 : i32, i32, i32
  }
  func.func @transform_7(%arg0: i32, %arg1: i32) -> (i32, i32, i32, i32) {
    %c0_i32 = arith.constant 0 : i32
    %c0_i32_0 = arith.constant 0 : i32
    %c0_i32_1 = arith.constant 0 : i32
    return %arg0, %arg1, %c0_i32, %c0_i32_0 : i32, i32, i32, i32
  }
}

</mosaic_0001>

<bundles_post_ra>
// kernel: tpu_custom_call.1
= control target key start
LH: loop header
LB: loop body
LE: loop exit
PB: predicated region body
PF: predicated region fallthrough
CT: control target
= control target key end

     0   :  { %s2395_s0 = inlined_call_operand.hbm [shape: f32[1,64], index: 0, kind: input, shape index: {}]   ;;  %s2396_s1 = inlined_call_operand.hbm [shape: f32[1,64], index: 1, kind: input, shape index: {}]   ;;  %s2397_s2 = inlined_call_operand.hbm [shape: f32[2,16,64], index: 2, kind: input, shape index: {}]   ;;  %s2398_s3 = inlined_call_operand.hbm [shape: f32[2,16,64], index: 3, kind: input, shape index: {}]   ;;  %s2399_s4 = inlined_call_operand.hbm [shape: f32[2,16,64], index: 4, kind: input, shape index: {}]   ;;  %s2400_s5 = inlined_call_operand.hbm [shape: f32[3,72,128], index: 5, kind: input, shape index: {}]   ;;  %s2401_s6 = inlined_call_operand.hbm [shape: f32[2,16,128], index: 6, kind: output, shape index: {0}]   ;;  %s2402_s7 = inlined_call_operand.hbm [shape: f32[2,2,2,8], index: 7, kind: output, shape index: {1}]  }
   0x1   :  { %2420 = sst [smem:[#allocation33_spill]] %s2395_s0 }
   0x2   :  { %2421 = sst [smem:[#allocation34_spill]] %s2396_s1 }
   0x3   :  { %2422 = sst [smem:[#allocation35_spill]] %s2397_s2 }
   0x4   :  { %2423 = sst [smem:[#allocation36_spill]] %s2398_s3 }
   0x5   :  { %2424 = sst [smem:[#allocation37_spill]] %s2399_s4 }
   0x6   :  { %2425 = sst [smem:[#allocation38_spill]] %s2400_s5 }
   0x7   :  { %2426 = sst [smem:[#allocation39_spill]] %s2401_s6 }
   0x8   :  { %2427 = sst [smem:[#allocation40_spill]] %s2402_s7 }
   0x9   :  { %13 = vsyncpa [#allocation4], 0 }
   0xa   :  { %14 = vsyncpa [#allocation7], 0 }
   0xb   :  { %15 = vsyncpa [#allocation5], 0 }
   0xc   :  { %17 = vsyncpa [#allocation5 + $0x1], 0 }
   0xd   :  { %18 = vsyncpa [#allocation14], 0 }
   0xe   :  { %20 = vsyncpa [#allocation14 + $0x1], 0  ;;  %s1926_s24 = smov 0   ;;  %s1928_s25 = smov 0  }
   0xf   :  { %s1930_s26 = smov 0   ;;  %s1932_s27 = smov 0  }
  0x10   :  { %s1934_s28 = smov 0   ;;  %s1936_s29 = smov 0  }
  0x11   :  { %s1938_s30 = smov 0   ;;  %s1940_s8 = smov 0  }
  0x12   :  { %s1942_s9 = smov 0   ;;  %s1944_s10 = smov 0  }
  0x13   :  { %s1946_s11 = smov 0   ;;  %s1948_s12 = smov 0  }
  0x14   :  { %s1950_s13 = smov 0   ;;  %s1952_s14 = smov 0  }
  0x15 LB: > { %2428 = sst [smem:[#allocation23_spill]] %s1844_s30  ;;  %s1997_s15 = sadd.s32 4294967295, %s1872_s14   ;;  %s1872_s14 = sphi %s1952_s14, %s26_s14   ;;  %s1868_s13 = sphi %s1950_s13, %s2499_s13   ;;  %s1864_s12 = sphi %s1948_s12, %s2498_s12   ;;  %s1860_s11 = sphi %s1946_s11, %s2497_s11   ;;  %s1856_s10 = sphi %s1944_s10, %s2496_s10   ;;  %s1852_s9 = sphi %s1942_s9, %s2495_s9   ;;  %s1848_s8 = sphi %s1940_s8, %s2494_s8   ;;  %s1844_s30 = sphi %s1938_s30, %s2493_s30   ;;  %s1840_s29 = sphi %s1936_s29, %s2492_s29   ;;  %s1836_s28 = sphi %s1934_s28, %s2491_s28   ;;  %s1832_s27 = sphi %s1932_s27, %s2490_s27   ;;  %s1828_s26 = sphi %s1930_s26, %s2489_s26   ;;  %s1824_s25 = sphi %s1928_s25, %s2488_s25   ;;  %s1820_s24 = sphi %s1926_s24, %s2487_s24  }
  0x16   : > { %2429 = sst [smem:[#allocation24_spill]] %s1848_s8  ;;  %p1219_p0 = scmp.ge.s32.totalorder %s1872_s14, 1 }
  0x17   : > { %2430 = sst [smem:[#allocation25_spill]] %s1856_s10  ;;  %p2416_p1 = scmp.eq.s32.totalorder %s1997_s15, 0 }
  0x18   : > { %2431 = sst [smem:[#allocation26_spill]] %s1860_s11  ;;  %p258_p2 = scmp.lt.s32.totalorder %s1872_s14, 5 }
  0x19   : > { %s2432_s0 = sld [smem:[#allocation33_spill]]  ;;  %s1874_s20 = smov [#allocation3]  }
  0x1a   : > { %p2005_p3 = pnand %p1219_p0, %p258_p2  ;;  %s272_s21 = sshll.u32 %s1874_s20, 4  ;;  %s273_s21 = int_to_ptr.vmem [resolvable:$true] %s272_s21 }
  0x1b   : > { %s1216_s23 = sadd.s32 4294967294, %s1872_s14   ;;  %s35_s16 = sadd.s32 1, %s1864_s12 }
  0x1c   : > { %s2433_s19 = scalar_select %p2005_p3, 1, 0 }
  0x1d   : > { %p1331_p4 = pneg %p2005_p3  ;;  %s38_s17 = sadd.s32 1, %s1868_s13 }
  0x1e   : > { %2434 = sst [smem:[#allocation27_spill]] %s2433_s19  ;;  %p36_p6 = scmp.ge.s32.totalorder %s35_s16, 2 }
  0x1f   : > { %s270_s18 = sshll.u32 %s2432_s0, 4  ;;  %p2013_p5 = pnand %p1331_p4, %p2416_p1  ;;  %s271_s18 = int_to_ptr.hbm [resolvable:$true] %s270_s18 }
  0x20   : > { %p96_p7 = scmp.ne.s32.totalorder %s1852_s9, %s1848_s8  ;;  %p97_p8 = scmp.eq.s32.totalorder %s1872_s14, 0 }
  0x21   : > { %1334 = dma.hbm_to_vmem [thread:$0]  (!%p2013_p5), %s271_s18, 16, %s273_s21, [#allocation4]  }
  0x22   : > { %s2501_s16 = smov (%p36_p6, %s35_s16), 0  ;;  %s2503_s17 = smov (!%p36_p6, %s38_s17), %s1868_s13 }
  0x23   : > { %2436 = sst [smem:[#allocation28_spill]] %s2501_s16  ;;  %p2035_p9 = por %p97_p8, %p96_p7 }
  0x24   : > { %p102_p10 = scmp.ne.s32.totalorder %s1848_s8, %s1844_s30  ;;  %p217_p11 = scmp.eq.s32.totalorder %s1997_s15, 3 }
  0x25   : > { %p223_p12 = scmp.eq.s32.totalorder %s1216_s23, 3  ;;  %p2417_p13 = scmp.lt.s32.totalorder %s1872_s14, 4 }
  0x26   : > { %p2045_p0 = por %p2416_p1, %p102_p10  ;;  %p2049_p2 = por %p217_p11, %p96_p7 }
  0x27   : > { %p2053_p4 = por %p223_p12, %p102_p10  ;;  %s309_s7 = sand.u32 1, %s1872_s14  }
  0x28   : > { %s2438_s21 = scalar_select %p2045_p0, 1, 0 }
  0x29   : > { %s2440_s0 = scalar_select %p2049_p2, 1, 0 }
  0x2a   : > { %2439 = sst [smem:[#allocation29_spill]] %s2438_s21  ;;  %s311_s30 = sand.u32 1, %s1852_s9  }
  0x2b   : > { %2441 = sst [smem:[#allocation30_spill]] %s2440_s0  ;;  %s1224_s6 = sshll.u32 %s311_s30, 3 }
  0x2c   : > { %s2442_s20 = scalar_select %p2053_p4, 1, 0 }
  0x2d   : > { %s1225_s23 = sshll.u32 %s1868_s13, 1  ;;  %s313_s8 = scalar_lea.vmem [#allocation8], %s1224_s6 }
  0x2e   : > { %2443 = sst [smem:[#allocation31_spill]] %s2442_s20  ;;  %s317_s11 = sadd.s32 %s1864_s12, %s1225_s23 }
  0x2f   : > { %s1226_s10 = sshll.u32 %s317_s11, 3  ;;  %s323_s19 = sshll.u32 %s313_s8, 4  ;;  %s324_s19 = int_to_ptr.vmem [resolvable:$true] %s323_s19 }
  0x30   : > { %s2444_s2 = sld [smem:[#allocation35_spill]]  ;;  %p1342_p6 = pnand %p2417_p13, %p2035_p9 }
  0x31   : > { %s2445_s1 = sld [smem:[#allocation34_spill]]  ;;  %s2071_s4 = scalar_lea.sflag [#allocation4], %s309_s7 }
  0x32   : > { %p40_p7 = scmp.ge.s32.totalorder %s2503_s17, 2  ;;  %s123_s7 = sadd.s32 1, %s1840_s29 }
  0x33   : > { %s2447_s18 = ssub.s32 %s1864_s12, %s2501_s16  ;;  %p130_p9 = scmp.ne.s32.totalorder %s1840_s29, %s1836_s28 }
  0x34   : > { %s2505_s17 = smov (%p40_p7, %s2503_s17), 0  ;;  %p136_p11 = scmp.ne.s32.totalorder %s1836_s28, %s1832_s27 }
  0x35   : > { %2446 = sst [smem:[#allocation32_spill]] %s2505_s17  ;;  %s2082_s11 = ssub.s32 %s1868_s13, %s2505_s17 }
  0x36   : > { %s319_s0 = scalar_lea.hbm %s2444_s2, %s1226_s10  ;;  %p132_p12 = por %p130_p9, %p97_p8 }
  0x37   : > { %s321_s20 = sshll.u32 %s319_s0, 4  ;;  %s282_s8 = sshll.u32 %s2445_s1, 4  ;;  %s322_s20 = int_to_ptr.hbm [resolvable:$true] %s321_s20  ;;  %s283_s8 = int_to_ptr.hbm [resolvable:$true] %s282_s8 }
  0x38   : > { %1344 = dma.hbm_to_vmem [thread:$0]  (!%p1342_p6), %s322_s20, 128, %s324_s19, %s2071_s4  }
  0x39   : > { %s1875_s0 = smov [#allocation6]   ;;  %s86_s19 = sor.u32 %s2447_s18, %s2082_s11 }
  0x3a   : > { %s284_s10 = sshll.u32 %s1875_s0, 4  ;;  %p87_p10 = scmp.eq.s32.totalorder %s86_s19, 0  ;;  %s285_s10 = int_to_ptr.vmem [resolvable:$true] %s284_s10 }
  0x3b   : > { %1337 = dma.hbm_to_vmem [thread:$0]  (!%p2013_p5), %s283_s8, 16, %s285_s10, [#allocation7]  }
  0x3c   : > { %s2448_s20 = sadd.s32 1, %s1852_s9  ;;  %p2102_p6 = por %p136_p11, %p2416_p1 }
  0x3d   : > { %s2096_s21 = scalar_select %p87_p10, %s1852_s9, %s2448_s20  }
  0x3e   : > { %s332_s30 = sand.u32 1, %s1840_s29   ;;  %p2415_p7 = scmp.eq.s32.totalorder %s2082_s11, 0 }
  0x3f   : > { %s1227_s6 = sshll.u32 %s332_s30, 3  ;;  %s1814_s18 = sshll.u32 %s1868_s13, 4 }
  0x40   : > { %s334_s8 = scalar_lea.vmem [#allocation9], %s1227_s6  ;;  %s2450_s3 = sld [smem:[#allocation36_spill]] }
  0x41   : > { %s347_s0 = sshll.u32 %s334_s8, 4  ;;  %p2121_p9 = pnand %p2417_p13, %p132_p12  ;;  %s348_s0 = int_to_ptr.vmem [resolvable:$true] %s347_s0 }
  0x42   : > { %s2111_s10 = scalar_select %p2415_p7, %s1840_s29, %s123_s7  }
  0x43   : > { %s2452_s5 = sld [smem:[#allocation38_spill]]  ;;  %p1584_p11 = pneg %p2121_p9 }
  0x46   : > { %s343_s20 = scalar_lea.hbm %s2450_s3, %s1814_s18 }
  0x47   : > { %s345_s30 = sshll.u32 %s343_s20, 4  ;;  %s346_s30 = int_to_ptr.hbm [resolvable:$true] %s345_s30 }
  0x48   : > { %s1580_s7 = sshra.s32 %s346_s30, 4  ;;  %s1581_s7 = int_to_ptr.hbm [resolvable:$true] %s1580_s7 }
  0x49   : > { %s293_s8 = sshll.u32 %s2452_s5, 4  ;;  %s1582_s17 = scalar_lea.hbm %s1581_s7, 8  ;;  %s294_s8 = int_to_ptr.hbm [resolvable:$true] %s293_s8 }
  0x4a   : > { %p1583_p10 = scmp.ne.s32.totalorder %s1581_s7, %s1582_s17  ;;  %p1588_p12 = scmp.lt.s32.totalorder %s1581_s7, %s2450_s3 }
  0x4c   : > { %p1585_p7 = pnand %p1584_p11, %p1583_p10 }
  0x4e   : > { %p1586_p1 = pneg %p1585_p7 }
  0x50   : > { %p1591_p13 = pnand %p1588_p12, %p1586_p1 }
  0x52   : > { %1594 = shalt.err (!%p1591_p13)
}
  0x53   : > { %1347 = dma.hbm_to_vmem [thread:$0]  (!%p2121_p9), %s346_s30, 128, %s348_s0, %s2071_s4  }
  0x54   : > { %s1876_s2 = smov [#allocation11]   ;;  %s1877_s20 = smov 128  }
  0x55   : > { %s295_s17 = sshll.u32 %s1876_s2, 4  ;;  %s1878_s1 = smov 8   ;;  %s296_s17 = int_to_ptr.vmem [resolvable:$true] %s295_s17 }
  0x56   : > { %1340 = dma.hbm_to_vmem [thread:$0]  (!%p2013_p5), %s294_s8, 3456, %s296_s17, [#allocation7], %s1877_s20, %s1877_s20, %s1878_s1  }
  0x57   : > { %s157_s6 = sadd.s32 1, %s1828_s26  ;;  %p164_p1 = scmp.ne.s32.totalorder %s1828_s26, %s1824_s25 }
  0x58   : > { %p170_p13 = scmp.ne.s32.totalorder %s1824_s25, %s1820_s24  ;;  %s356_s7 = sand.u32 1, %s1828_s26  }
  0x59   : > { %p166_p7 = por %p164_p1, %p97_p8  ;;  %p2453_p10 = scmp.eq.s32.totalorder %s1997_s15, 0 }
  0x5a   : > { %s1231_s0 = sshll.u32 %s356_s7, 3  ;;  %p2455_p9 = scmp.eq.s32.totalorder %s2082_s11, 0 }
  0x5b   : > { %p2148_p11 = por %p170_p13, %p2453_p10  ;;  %s1816_s19 = sadd.s32 8, %s1814_s18 }
  0x5c   : > { %s2155_s30 = scalar_select %p2455_p9, %s1828_s26, %s157_s6  }
  0x5d   : > { %s2456_s2 = sld [smem:[#allocation37_spill]]  ;;  %s358_s20 = scalar_lea.vmem [#allocation10], %s1231_s0 }
  0x5e   : > { %s371_s24 = sshll.u32 %s358_s20, 4  ;;  %p2457_p5 = scmp.lt.s32.totalorder %s1872_s14, 4  ;;  %s372_s24 = int_to_ptr.vmem [resolvable:$true] %s371_s24 }
  0x60   : > { %p1348_p8 = pnand %p2457_p5, %p166_p7 }
  0x62   : > { %p1644_p1 = pneg %p1348_p8 }
  0x63   : > { %s367_s17 = scalar_lea.hbm %s2456_s2, %s1816_s19  ;;  %s1647_s6 = scalar_lea.hbm %s2456_s2, 32 }
  0x64   : > { %s369_s1 = sshll.u32 %s367_s17, 4  ;;  %s370_s1 = int_to_ptr.hbm [resolvable:$true] %s369_s1 }
  0x65   : > { %s1640_s3 = sshra.s32 %s370_s1, 4  ;;  %s1641_s3 = int_to_ptr.hbm [resolvable:$true] %s1640_s3 }
  0x66   : > { %s1642_s5 = scalar_lea.hbm %s1641_s3, 8 }
  0x67   : > { %p1643_p12 = scmp.ne.s32.totalorder %s1641_s3, %s1642_s5  ;;  %p1649_p9 = scmp.lt.s32.totalorder %s1647_s6, %s1642_s5 }
  0x69   : > { %p1645_p13 = pnand %p1644_p1, %p1643_p12 }
  0x6b   : > { %p1646_p10 = pneg %p1645_p13 }
  0x6d   : > { %p1651_p4 = pnand %p1649_p9, %p1646_p10 }
  0x6f   : > { %1654 = shalt.err (!%p1651_p4)
}
  0x70   : > { %1350 = dma.hbm_to_vmem [thread:$0]  (!%p1348_p8), %s370_s1, 128, %s372_s24, %s2071_s4  }
  0x71   : > { %380 = sbr.rel (%p2005_p3) target bundleno = 1128 (0x468), region = 44  ;;  %p2459_p7 = scmp.eq.s32.totalorder (!%p2005_p3), %s1997_s15, 0 }
  0x76   : > { %1783 = dma.done.wait (%p2459_p7), [#allocation4], 16   ;;  %p2460_p5 = pmov %p2459_p7 }
  0x78   : > { %1785 = vsyncadd (%p2460_p5), [#allocation4], 4294967280  ;;  %p2461_p12 = pmov %p2460_p5 }
  0x79   : > { %p2462_p1 = pmov %p2460_p5 }
  0x7a   : > { %1787 = dma.done.wait (%p2461_p12), [#allocation7], 16  }
  0x7b   : > { %1789 = vsyncadd (%p2462_p1), [#allocation7], 4294967280  ;;  %s2463_s3 = sld [smem:[#allocation24_spill]]  ;;  %s392_s0 = sand.u32 1, %s1997_s15  }
  0x7c   : > { %s393_s22 = scalar_lea.sflag [#allocation4], %s392_s0 }
  0x81   : > { %s2180_s4 = sand.u32 1, %s2463_s3  }
  0x82   : > { %s1237_s19 = sshll.u32 %s2180_s4, 3 }
  0x83   : > { %s396_s8 = scalar_lea.vmem [#allocation8], %s1237_s19 }
  0x84   : > { %1791 = dma.done.wait (%p2045_p0), %s393_s22, 128  }
  0x85   : > { %1793 = vsyncadd (%p2045_p0), %s393_s22, 4294967168  ;;  %s404_s17 = sand.u32 1, %s1836_s28  }
  0x86   : > { %s2190_s20 = sshll.u32 %s404_s17, 3 }
  0x87   : > { %s406_s24 = scalar_lea.vmem [#allocation9], %s2190_s20 }
  0x88   : > { %1795 = dma.done.wait (%p2102_p6), %s393_s22, 128  }
  0x89   : > { %1797 = vsyncadd (%p2102_p6), %s393_s22, 4294967168  ;;  %s414_s1 = sand.u32 1, %s1824_s25  }
  0x8a   : > { %s2198_s11 = sshll.u32 %s414_s1, 3 }
  0x8b   : > { %s416_s18 = scalar_lea.vmem [#allocation10], %s2198_s11 }
  0x8c   : > { %1799 = dma.done.wait (%p2148_p11), %s393_s22, 128  }
  0x8d   : > { %1801 = vsyncadd (%p2148_p11), %s393_s22, 4294967168  ;;  %p2465_p3 = pmov %p2462_p1 }
  0x8e   : > { %p2466_p0 = pmov %p2462_p1 }
  0x8f   : > { %1803 = dma.done.wait (%p2465_p3), [#allocation7], 3456  }
  0x90   : > { %1805 = vsyncadd (%p2466_p0), [#allocation7], 4294963840  ;;  %vm474_vm0 = vcmask 31744   ;;  %vm476_vm1 = vcmask 25600   ;;  %vm478_vm2 = vcmask 589344   ;;  %v1879_v0 = vmov 0.0  }
  0x91   : > { %475 = vst.msk [vmem:[#allocation2] sm:$0xff] %vm474_vm0, %v1879_v0  ;;  %vm480_vm3 = vcmask 583200   ;;  %s1242_s23 = sshll.u32 %s2180_s4, 1  ;;  %v482_v1 = vld [vmem:[%s396_s8] sm:$0xff]  ;;  %s1880_s27 = smov 4   ;;  %vm487_vm4 = vcmask 556064  }
  0x92   : > { %477 = vst.msk [vmem:[#allocation2 + $0x8] sm:$0x3] %vm476_vm1, %v1879_v0  ;;  %484 = vrot.lane.b32.xlu0 %v482_v1, %s1880_s27  ;;  %s2212_s15 = scalar_lea.vmem [#allocation12], %s1237_s19  ;;  %s2214_s6 = scalar_lea.vmem [#allocation13], %s1242_s23 }
  0x93   : > { %479 = vst.msk [vmem:[#allocation2] sm:$0xff] %vm478_vm2, %v1879_v0  ;;  %s2467_s7 = sld [smem:[#allocation25_spill]] }
  0x94   : > { %481 = vst.msk [vmem:[#allocation2 + $0x8] sm:$0x3] %vm480_vm3, %v1879_v0 }
  0x99   : > { %p1243_p4 = scmp.ne.s32.totalorder %s2467_s7, 0 }
 0x101   : > { %492 = sbr.rel (%p1243_p4) target bundleno = 264 (0x108), region = 72 }
 0x104   : > { %v485_v2 = vpop.permute.xlu0 %484 }
 0x105   : > { %488 = vst.msk [vmem:[#allocation2 + $0x1] sm:$0xff] %vm487_vm4, %v485_v2 }
 0x106   : > { %vm493_vm5 = vcmask 548896   ;;  %v1881_v3 = vmov 0.0  }
 0x107   : > { %494 = vst.msk [vmem:[#allocation2] sm:$0x1] %vm493_vm5, %v1881_v3 }
 0x108 PF: > { %s2468_s3 = sld [smem:[#allocation25_spill]] }
 0x10e   : > { %p1244_p6 = scmp.le.s32.totalorder %s2468_s3, 0 }
 0x10f   : > { %s1882_s5 = smov (!%p1244_p6), 4  }
 0x110   : > { %498 = sbr.rel (%p1244_p6) target bundleno = 394 (0x18a), region = 76 }
 0x115   : > { %v499_v4 = vld [vmem:[%s406_s24 + $0x7] sm:$0x1]  ;;  %vm504_vm6 = vcmask 548896  }
 0x116   : > { %501 = vrot.lane.b32.xlu0 %v499_v4, %s1882_s5 }
 0x188   : > { %v502_v5 = vpop.permute.xlu0 %501 }
 0x189   : > { %505 = vst.msk [vmem:[#allocation2] sm:$0x1] %vm504_vm6, %v502_v5 }
 0x18a PF: > { %s2469_s0 = sld [smem:[#allocation25_spill]] }
 0x190   : > { %p1245_p11 = scmp.ne.s32.totalorder %s2469_s0, 1 }
 0x192   : > { %509 = sbr.rel (%p1245_p11) target bundleno = 409 (0x199), region = 80 }
 0x197   : > { %vm510_vm7 = vcmask 548896   ;;  %v1883_v6 = vmov 0.0  }
 0x198   : > { %511 = vst.msk [vmem:[#allocation2 + $0x9] sm:$0x1] %vm510_vm7, %v1883_v6 }
 0x199 PF: > { %s2470_s19 = sld [smem:[#allocation25_spill]] }
 0x19f   : > { %p1246_p8 = scmp.ge.s32.totalorder %s2470_s19, 1 }
 0x1a0   : > { %s1884_s22 = smov (!%p1246_p8), 4  }
 0x1a1   : > { %515 = sbr.rel (%p1246_p8) target bundleno = 539 (0x21b), region = 84 }
 0x1a6   : > { %v516_v7 = vld [vmem:[%s416_s18] sm:$0x1]  ;;  %vm521_vm8 = vcmask 548896  }
 0x1a7   : > { %518 = vrot.lane.b32.xlu0 %v516_v7, %s1884_s22 }
 0x219   : > { %v519_v8 = vpop.permute.xlu0 %518 }
 0x21a   : > { %522 = vst.msk [vmem:[#allocation2 + $0x9] sm:$0x1] %vm521_vm8, %v519_v8 }
 0x21b PF: > { %v532_v9 = vld [vmem:[#allocation11 + $0x40] sm:$0xff]  ;;  %v531_v10 = vld [vmem:[#allocation11 + $0x38] sm:$0xff]  ;;  %v530_v11 = vld [vmem:[#allocation11 + $0x30] sm:$0xff]  ;;  %v626_v14 = vlaneseq  ;;  %v1885_v35 = vmov 1.0   ;;  %vm544_vm13 = vcmask 588800   ;;  %s2473_s8 = sld [smem:[#allocation26_spill]] }
 0x21c   : > { %578 = vmatpush.msra.mxu2 %v532_v9  ;;  %v543_v12 = vld [vmem:[#allocation11 + $0x88] sm:$0xff]  ;;  %v542_v13 = vld [vmem:[#allocation11 + $0x80] sm:$0xff]  ;;  %v541_v16 = vld [vmem:[#allocation11 + $0x78] sm:$0xff]  ;;  %s2474_s17 = sld [smem:[#allocation25_spill]]  ;;  %s1004_s5 = sshll.u32 %s2212_s15, 4  ;;  %s1005_s5 = int_to_ptr.vmem [resolvable:$true] %s1004_s5 }
 0x21d   : > { %555 = vmatpush.msra.mxu0 %v543_v12  ;;  %v529_v15 = vld [vmem:[#allocation11 + $0x28] sm:$0xff]  ;;  %v2224_v17 = vshrl.u32 %v626_v14, 7  ;;  %v528_v18 = vld [vmem:[#allocation11 + $0x20] sm:$0xff]  ;;  %v540_v19 = vld [vmem:[#allocation11 + $0x70] sm:$0xff]  ;;  %v2227_v21 = vand.u32 127, %v626_v14  ;;  %s2476_s27 = sld [smem:[#allocation39_spill]] }
 0x21e   : > { %579 = vmatpush.msra.mxu2 %v531_v10  ;;  %v527_v24 = vld [vmem:[#allocation11 + $0x18] sm:$0xff]  ;;  %v539_v25 = vld [vmem:[#allocation11 + $0x68] sm:$0xff]  ;;  %v526_v30 = vld [vmem:[#allocation11 + $0x10] sm:$0xff]  ;;  %s985_s19 = scalar_lea.sflag [#allocation5], %s2180_s4 }
 0x21f   : > { %556 = vmatpush.msra.mxu0 %v542_v13  ;;  %v642_v20 = vadd.s32 120, %v2224_v17  ;;  %v641_v22 = vadd.s32 112, %v2224_v17  ;;  %v640_v23 = vadd.s32 104, %v2224_v17  ;;  %v639_v26 = vadd.s32 96, %v2224_v17  ;;  %v538_v31 = vld [vmem:[#allocation11 + $0x60] sm:$0xff]  ;;  %v525_v33 = vld [vmem:[#allocation11 + $0x8] sm:$0xff] }
 0x220   : > { %580 = vmatpush.msra.mxu2 %v530_v11  ;;  %v537_v34 = vld [vmem:[#allocation11 + $0x58] sm:$0xff]  ;;  %v524_v36 = vld [vmem:[#allocation11] sm:$0xff]  ;;  %v536_v37 = vld [vmem:[#allocation11 + $0x50] sm:$0xff]  ;;  %v638_v52 = vadd.s32 88, %v2224_v17  ;;  %v637_v53 = vadd.s32 80, %v2224_v17  ;;  %v636_v54 = vadd.s32 72, %v2224_v17 }
 0x221   : > { %557 = vmatpush.msra.mxu0 %v541_v16  ;;  %v752_v27 = vand.u32 7, %v642_v20  ;;  %v745_v28 = vand.u32 7, %v641_v22  ;;  %v738_v29 = vand.u32 7, %v640_v23  ;;  %v731_v32 = vand.u32 7, %v639_v26  ;;  %v601_v38 = vld [vmem:[#allocation11 + $0xd0] sm:$0xff]  ;;  %v523_v40 = vld [vmem:[#allocation2] sm:$0xff] }
 0x222   : > { %581 = vmatpush.msra.mxu2 %v529_v15  ;;  %v535_v41 = vld [vmem:[#allocation11 + $0x48] sm:$0xff]  ;;  %v533_v43 = vld [vmem:[#allocation2 + $0x1] sm:$0xff]  ;;  %v597_v46 = vld [vmem:[#allocation11 + $0xb0] sm:$0xff]  ;;  %v635_v55 = vadd.s32 64, %v2224_v17  ;;  %v724_v56 = vand.u32 7, %v638_v52  ;;  %v717_v57 = vand.u32 7, %v637_v53 }
 0x223   : > { %558 = vmatpush.msra.mxu0 %v540_v19  ;;  %vm852_vm9 = vcmp.eq.s32.totalorder %v752_v27, %v2227_v21  ;;  %vm851_vm10 = vcmp.eq.s32.totalorder %v745_v28, %v2227_v21  ;;  %vm850_vm11 = vcmp.eq.s32.totalorder %v738_v29, %v2227_v21  ;;  %vm2240_vm12 = vcmp.eq.s32.totalorder %v731_v32, %v2227_v21  ;;  %v600_v42 = vld [vmem:[#allocation11 + $0xc8] sm:$0xff]  ;;  %v599_v44 = vld [vmem:[#allocation11 + $0xc0] sm:$0xff]  ;;  %v598_v45 = vld [vmem:[#allocation11 + $0xb8] sm:$0xff]  ;;  %s1303_s20 = sshll.u32 %s2473_s8, 1  ;;  %s2477_s7 = smov %s2476_s27 }
 0x224   : > { %582 = vmatpush.msra.mxu2 %v528_v18  ;;  %1267 = vmatpush.msk.msra.mxu3 %vm852_vm9, %v1885_v35  ;;  %v596_v47 = vld [vmem:[#allocation11 + $0xa8] sm:$0xff]  ;;  %v595_v48 = vld [vmem:[#allocation11 + $0xa0] sm:$0xff]  ;;  %v594_v49 = vld [vmem:[#allocation11 + $0x98] sm:$0xff]  ;;  %v710_v58 = vand.u32 7, %v636_v54  ;;  %vm848_vm14 = vcmp.eq.s32.totalorder %v724_v56, %v2227_v21  ;;  %vm847_vm15 = vcmp.eq.s32.totalorder %v717_v57, %v2227_v21  ;;  %v703_v59 = vand.u32 7, %v635_v55  ;;  %s1000_s1 = sadd.s32 %s2474_s17, %s1303_s20  ;;  %s1690_s20 = scalar_lea.hbm %s2477_s7, 32 }
 0x225   : > { %559 = vmatpush.msra.mxu0 %v539_v25  ;;  %1285 = vmatpush.msk.msra.mxu1 %vm852_vm9, %v1885_v35  ;;  %v593_v50 = vld [vmem:[#allocation11 + $0x90] sm:$0xff]  ;;  %v591_v51 = vld [vmem:[#allocation2 + $0x2] sm:$0xff]  ;;  %v634_v60 = vadd.s32 56, %v2224_v17  ;;  %v633_v62 = vadd.s32 48, %v2224_v17  ;;  %v632_v0 = vadd.s32 40, %v2224_v17  ;;  %v631_v2 = vadd.s32 32, %v2224_v17 }
 0x226   : > { %583 = vmatpush.msra.mxu2 %v527_v24  ;;  %1268 = vmatpush.msk.msra.mxu3 %vm851_vm10, %v1885_v35  ;;  %vm846_vm0 = vcmp.eq.s32.totalorder %v710_v58, %v2227_v21  ;;  %vm845_vm1 = vcmp.eq.s32.totalorder %v703_v59, %v2227_v21  ;;  %v630_v4 = vadd.s32 24, %v2224_v17  ;;  %v629_v5 = vadd.s32 16, %v2224_v17  ;;  %s1304_s11 = sshll.u32 %s1000_s1, 3 }
 0x227   : > { %560 = vmatpush.msra.mxu0 %v538_v31  ;;  %1286 = vmatpush.msk.msra.mxu1 %vm851_vm10, %v1885_v35  ;;  %v696_v61 = vand.u32 7, %v634_v60  ;;  %v689_v63 = vand.u32 7, %v633_v62  ;;  %v682_v1 = vand.u32 7, %v632_v0  ;;  %v675_v3 = vand.u32 7, %v631_v2  ;;  %s1002_s3 = scalar_lea.hbm %s2476_s27, %s1304_s11 }
 0x228   : > { %584 = vmatpush.msra.mxu2 %v526_v30  ;;  %1269 = vmatpush.msk.msra.mxu3 %vm850_vm11, %v1885_v35  ;;  %v628_v6 = vadd.s32 8, %v2224_v17  ;;  %v668_v7 = vand.u32 7, %v630_v4  ;;  %v661_v8 = vand.u32 7, %v629_v5  ;;  %v647_v10 = vand.u32 7, %v2224_v17  ;;  %s1006_s0 = sshll.u32 %s1002_s3, 4  ;;  %s1007_s0 = int_to_ptr.hbm [resolvable:$true] %s1006_s0 }
 0x229   : > { %561 = vmatpush.msra.mxu0 %v537_v34  ;;  %1287 = vmatpush.msk.msra.mxu1 %vm850_vm11, %v1885_v35  ;;  %vm844_vm2 = vcmp.eq.s32.totalorder %v696_v61, %v2227_v21  ;;  %vm843_vm3 = vcmp.eq.s32.totalorder %v689_v63, %v2227_v21  ;;  %vm842_vm4 = vcmp.eq.s32.totalorder %v682_v1, %v2227_v21  ;;  %v889_v11 = vand.u32 7, %v2227_v21  ;;  %s1684_s22 = sshra.s32 %s1007_s0, 4  ;;  %s1685_s22 = int_to_ptr.hbm [resolvable:$true] %s1684_s22 }
 0x22a   : > { %585 = vmatpush.msra.mxu2 %v525_v33  ;;  %1270 = vmatpush.msk.msra.mxu3 %vm2240_vm12, %v1885_v35  ;;  %vm841_vm5 = vcmp.eq.s32.totalorder %v675_v3, %v2227_v21  ;;  %v654_v9 = vand.u32 7, %v628_v6  ;;  %vm840_vm6 = vcmp.eq.s32.totalorder %v668_v7, %v2227_v21  ;;  %vm839_vm7 = vcmp.eq.s32.totalorder %v661_v8, %v2227_v21  ;;  %s1686_s2 = scalar_lea.hbm %s1685_s22, 8  ;;  %p1691_p7 = scmp.lt.s32.totalorder %s1685_s22, %s2477_s7 }
 0x22b   : > { %562 = vmatpush.msra.mxu0 %v536_v37  ;;  %1288 = vmatpush.msk.msra.mxu1 %vm2240_vm12, %v1885_v35  ;;  %vm837_vm9 = vcmp.eq.s32.totalorder %v647_v10, %v2227_v21  ;;  %vm897_vm10 = vcmp.eq.s32.totalorder %v889_v11, %v2224_v17  ;;  %vm927_vm11 = vcmask 64512   ;;  %vm980_vm12 = vcmask 57344   ;;  %p1687_p13 = scmp.ne.s32.totalorder %s1685_s22, %s1686_s2  ;;  %p1692_p5 = scmp.lt.s32.totalorder %s1690_s20, %s1686_s2 }
 0x22c   : > { %586 = vmatpush.msra.mxu2 %v524_v36  ;;  %1271 = vmatpush.msk.msra.mxu3 %vm848_vm14, %v1885_v35  ;;  %vm838_vm8 = vcmp.eq.s32.totalorder %v654_v9, %v2227_v21 }
 0x22d   : > { %1248 = vmatmul.msk.f32.vlgmr.msra.gmra.mxu2 %vm544_vm13, %v523_v40  ;;  %563 = vmatpush.msra.mxu0 %v535_v41  ;;  %p1688_p10 = pnand %p1687_p13, %p2049_p2  ;;  %p1693_p12 = por %p1692_p5, %p1691_p7 }
 0x22e   : > { %612 = vmatpush.msrb.mxu2 %v601_v38  ;;  %1247 = vmatmul.msk.f32.vlgmr.msra.gmra.mxu0 %vm544_vm13, %v533_v43 }
 0x22f   : > { %1289 = vmatpush.msk.msra.mxu1 %vm848_vm14, %v1885_v35  ;;  %1272 = vmatpush.msk.msra.mxu3 %vm847_vm15, %v1885_v35  ;;  %p1689_p9 = pneg %p1688_p10 }
 0x230   : > { %613 = vmatpush.msrb.mxu2 %v600_v42  ;;  %1283 = vmatpush.msk.msrb.mxu0 %vm897_vm10, %v1885_v35 }
 0x231   : > { %1290 = vmatpush.msk.msra.mxu1 %vm847_vm15, %v1885_v35  ;;  %1273 = vmatpush.msk.msra.mxu3 %vm846_vm0, %v1885_v35  ;;  %p1694_p1 = pnand %p1693_p12, %p1689_p9 }
 0x232   : > { %614 = vmatpush.msrb.mxu2 %v599_v44 }
 0x233   : > { %1291 = vmatpush.msk.msra.mxu1 %vm846_vm0, %v1885_v35  ;;  %1274 = vmatpush.msk.msra.mxu3 %vm845_vm1, %v1885_v35 }
 0x234   : > { %615 = vmatpush.msrb.mxu2 %v598_v45 }
 0x235   : > { %1292 = vmatpush.msk.msra.mxu1 %vm845_vm1, %v1885_v35  ;;  %1275 = vmatpush.msk.msra.mxu3 %vm844_vm2, %v1885_v35 }
 0x236   : > { %616 = vmatpush.msrb.mxu2 %v597_v46 }
 0x237   : > { %1293 = vmatpush.msk.msra.mxu1 %vm844_vm2, %v1885_v35  ;;  %1276 = vmatpush.msk.msra.mxu3 %vm843_vm3, %v1885_v35 }
 0x238   : > { %617 = vmatpush.msrb.mxu2 %v596_v47 }
 0x239   : > { %1294 = vmatpush.msk.msra.mxu1 %vm843_vm3, %v1885_v35  ;;  %1277 = vmatpush.msk.msra.mxu3 %vm842_vm4, %v1885_v35 }
 0x23a   : > { %618 = vmatpush.msrb.mxu2 %v595_v48 }
 0x23b   : > { %1295 = vmatpush.msk.msra.mxu1 %vm842_vm4, %v1885_v35  ;;  %1278 = vmatpush.msk.msra.mxu3 %vm841_vm5, %v1885_v35 }
 0x23c   : > { %619 = vmatpush.msrb.mxu2 %v594_v49 }
 0x23d   : > { %1296 = vmatpush.msk.msra.mxu1 %vm841_vm5, %v1885_v35  ;;  %1279 = vmatpush.msk.msra.mxu3 %vm840_vm6, %v1885_v35 }
 0x23e   : > { %620 = vmatpush.msrb.mxu2 %v593_v50 }
 0x23f   : > { %1249 = vmatmul.msk.f32.vlgmr.msrb.gmra.mxu2 %vm544_vm13, %v591_v51  ;;  %1297 = vmatpush.msk.msra.mxu1 %vm840_vm6, %v1885_v35 }
 0x240   : > { %1280 = vmatpush.msk.msra.mxu3 %vm839_vm7, %v1885_v35 }
 0x241   : > { %1298 = vmatpush.msk.msra.mxu1 %vm839_vm7, %v1885_v35 }
 0x242   : > { %1281 = vmatpush.msk.msra.mxu3 %vm838_vm8, %v1885_v35 }
 0x243   : > { %1299 = vmatpush.msk.msra.mxu1 %vm838_vm8, %v1885_v35 }
 0x244   : > { %1282 = vmatpush.msk.msra.mxu3 %vm837_vm9, %v1885_v35 }
 0x245   : > { %1300 = vmatpush.msk.msra.mxu1 %vm837_vm9, %v1885_v35 }
 0x2ab   : > { %v565_v13 = vpop.f32.mrf.mxu0 }
 0x2b0   : > { %v588_v12 = vpop.f32.mrf.mxu2 }
 0x2b1   : > { %v589_v14 = vadd.f32 %v588_v12, %v565_v13 }
 0x2c2   : > { %v622_v15 = vpop.f32.mrf.mxu2 }
 0x2c3   : > { %v625_v16 = vadd.f32 %v622_v15, %v589_v14 }
 0x2c5   : > { %983 = vst [vmem:[%s2212_s15] sm:$0xff] %v625_v16  ;;  %v900_v18 = vrot.slane %v625_v16, 4 }
 0x2c7   : > { %v901_v19 = vadd.f32 %v900_v18, %v625_v16 }
 0x2c9   : > { %v902_v20 = vrot.slane %v901_v19, 2 }
 0x2cb   : > { %v903_v22 = vadd.f32 %v902_v20, %v901_v19 }
 0x2cd   : > { %v904_v23 = vrot.slane %v903_v22, 1 }
 0x2cf   : > { %v905_v24 = vadd.f32 %v904_v23, %v903_v22 }
 0x2d1   : > { %922 = vmatmul.f32.vlgmr.msra.gmra.mxu3 %v905_v24 }
 0x354   : > { %v923_v21 = vpop.f32.mrf.mxu3 }
 0x355   : > { %v926_v17 = vmul.f32 0.0078125, %v923_v21 }
 0x357   : > { %1284 = vmatmul.msk.f32.vlgmr.msrb.gmra.mxu0 %vm927_vm11, %v926_v17  ;;  %981 = vst.msk [vmem:[%s2214_s6] sm:$0x1] %vm980_vm12, %v926_v17 }
 0x3d4   : > { %v948_v25 = vpop.f32.mrf.mxu0 }
 0x3d5   : > { %v951_v26 = vperm.slane %v948_v25, 0 }
 0x3d7   : > { %v952_v27 = vsub.f32 %v625_v16, %v951_v26 }
 0x3d9   : > { %v953_v28 = vmul.f32 %v952_v27, %v952_v27 }
 0x3db   : > { %v954_v29 = vrot.slane %v953_v28, 4 }
 0x3dd   : > { %v955_v30 = vadd.f32 %v954_v29, %v953_v28 }
 0x3df   : > { %v956_v31 = vrot.slane %v955_v30, 2 }
 0x3e1   : > { %v957_v32 = vadd.f32 %v956_v31, %v955_v30 }
 0x3e3   : > { %v958_v33 = vrot.slane %v957_v32, 1 }
 0x3e5   : > { %v959_v34 = vadd.f32 %v958_v33, %v957_v32 }
 0x3e7   : > { %976 = vmatmul.f32.vlgmr.msra.gmra.mxu1 %v959_v34 }
 0x3e8   : > { %1697 = shalt.err (!%p1694_p1)
}
 0x3e9   : > { %1327 = dma.vmem_to_hbm [thread:$0]  (%p2049_p2), %s1005_s5, 128, %s1007_s0, %s985_s19  }
 0x3ea   : > { %s1306_s15 = sshll.u32 %s1000_s1, 1  ;;  %s2478_s3 = sld [smem:[#allocation40_spill]] }
 0x3eb   : > { %s1020_s17 = sshll.u32 %s2214_s6, 4  ;;  %s990_s2 = scalar_lea.sflag [#allocation14], %s2180_s4  ;;  %s1021_s17 = int_to_ptr.vmem [resolvable:$true] %s1020_s17 }
 0x3f0   : > { %s1018_s8 = scalar_lea.hbm %s2478_s3, %s1306_s15  ;;  %s1718_s0 = scalar_lea.hbm %s2478_s3, 8 }
 0x3f1   : > { %s1022_s16 = sshll.u32 %s1018_s8, 4  ;;  %s1023_s16 = int_to_ptr.hbm [resolvable:$true] %s1022_s16 }
 0x3f2   : > { %s1712_s22 = sshra.s32 %s1023_s16, 4  ;;  %s1713_s22 = int_to_ptr.hbm [resolvable:$true] %s1712_s22 }
 0x3f3   : > { %s1714_s20 = scalar_lea.hbm %s1713_s22, 2  ;;  %p1719_p6 = scmp.lt.s32.totalorder %s1713_s22, %s2478_s3 }
 0x3f4   : > { %p1715_p3 = scmp.ne.s32.totalorder %s1713_s22, %s1714_s20  ;;  %p1720_p11 = scmp.lt.s32.totalorder %s1718_s0, %s1714_s20 }
 0x3f6   : > { %p1716_p0 = pnand %p1715_p3, %p2049_p2  ;;  %p1721_p8 = por %p1720_p11, %p1719_p6 }
 0x3f8   : > { %p1717_p4 = pneg %p1716_p0 }
 0x3fa   : > { %p1722_p13 = pnand %p1721_p8, %p1717_p4 }
 0x464   : > { %v977_v35 = vpop.f32.mrf.mxu1 }
 0x465   : > { %982 = vst.msk [vmem:[%s2214_s6 + $0x1] sm:$0x1] %vm980_vm12, %v977_v35 }
 0x466   : > { %1725 = shalt.err (!%p1722_p13)
}
 0x467   : > { %1328 = dma.vmem_to_hbm [thread:$0]  (%p2049_p2), %s1021_s17, 32, %s1023_s16, %s990_s2  }
 0x468 PF: > { %s2479_s4 = sld [smem:[#allocation23_spill]]  ;;  %p1365_p10 = scmp.ge.s32.totalorder %s1872_s14, 2 }
 0x469   : > { %s2480_s6 = sld [smem:[#allocation31_spill]] }
 0x46e   : > { %s1034_s11 = sand.u32 1, %s2479_s4  }
 0x46f   : > { %p2481_p9 = scmp.ne.s32.totalorder %s2480_s6, 0  ;;  %s1035_s15 = scalar_lea.sflag [#allocation5], %s1034_s11 }
 0x471   : > { %p1352_p7 = pnand %p1365_p10, %p2481_p9 }
 0x473   : > { %p1353_p5 = pneg %p1352_p7 }
 0x475   : > { %1807 = dma.done.wait (%p1353_p5), %s1035_s15, 128  }
 0x476   : > { %1809 = vsyncadd (%p1353_p5), %s1035_s15, 4294967168  ;;  %s1045_s23 = scalar_lea.sflag [#allocation14], %s1034_s11 }
 0x477   : > { %1811 = dma.done.wait (%p1353_p5), %s1045_s23, 32  }
 0x478   : > { %1813 = vsyncadd (%p1353_p5), %s1045_s23, 4294967264  ;;  %s26_s14 = sadd.s32 1, %s1872_s14   ;;  %s2483_s16 = sld [smem:[#allocation24_spill]] }
 0x479   : > { %p2348_p12 = scmp.ge.s32.totalorder %s26_s14, 6   ;;  %s2484_s17 = sld [smem:[#allocation28_spill]] }
 0x47a   : > { %s2485_s2 = sld [smem:[#allocation32_spill]]  ;;  %s2487_s24 = smov %s1824_s25 }
 0x47b   : > { %s2488_s25 = smov %s1828_s26  ;;  %s2489_s26 = smov %s2155_s30 }
 0x47c   : > { %s2490_s27 = smov %s1836_s28  ;;  %s2491_s28 = smov %s1840_s29 }
 0x47d   : > { %s2492_s29 = smov %s2111_s10  ;;  %s2494_s8 = smov %s1852_s9 }
 0x47e   : > { %s2493_s30 = smov %s2483_s16  ;;  %s2495_s9 = smov %s2096_s21 }
 0x47f   : > { %s2496_s10 = smov %s1864_s12  ;;  %s2497_s11 = smov %s1868_s13 }
 0x480   : > { %s2498_s12 = smov %s2484_s17  ;;  %s2499_s13 = smov %s2485_s2 }
 0x481   :  { %25 = sbr.rel (!%p2348_p12) target bundleno = 21 (0x15), region = 157 }
 0x486   :  { %1051 = vsyncpa [#allocation4], 1 }
 0x487   :  { %1053 = vsyncpa [#allocation4 + $0x1], 1 }
 0x488   :  { %1054 = vsyncpa [#allocation7], 1 }
 0x489   :  { %1055 = vsyncpa [#allocation5], 1 }
 0x48a   :  { %1057 = vsyncpa [#allocation5 + $0x1], 1 }
 0x48b   :  { %1058 = vsyncpa [#allocation14], 1 }
 0x48c   :  { %1060 = vsyncpa [#allocation14 + $0x1], 1 }

</bundles_post_ra>
